<compile_context>
chip_gen: v5e
topology: v5e:2x2
jax: 0.10.0
libtpu: 0.0.40
codegen_flags: <defaults>
</compile_context>

<pallas_src>
from functools import partial

import jax
import jax.numpy as jnp
from jax import lax
from jax.experimental import pallas as pl
from jax.experimental.pallas import tpu as pltpu


def _dwal_kernel(s_ref, out_ref, *, lr):
    # s_ref: SMEM f32[4] = [loss1, loss2, w0, w1]  (scalar-path reads).
    l1 = s_ref[0]
    l2 = s_ref[1]
    w0 = s_ref[2]
    w1 = s_ref[3]

    # Scalar-path weight update: a = w0 + lr*(l1 - l2), b = w1 + lr*(l2 - l1).
    d = lr * (l1 - l2)
    z = (w1 - d) - (w0 + d)                   # b - a

    # 2-way softmax == sigmoid of the difference (exact and overflow-safe):
    #   p0 = 1 / (1 + exp(b - a)),  p1 = 1 - p0.
    # The exp stays on a f32 vector (EUP) so it lowers on v5e / v6e / v7x.
    zf = jnp.full((1, 128), z, dtype=jnp.float32)
    p0 = 1.0 / (1.0 + jnp.exp(zf))            # every lane holds p0
    total = l2 + p0 * (l1 - l2)               # every lane holds the total loss

    # Single lane-dense store: lane 0 = total, lane 1 = p0, lanes >= 2 = p1.
    lane = lax.broadcasted_iota(jnp.int32, (1, 128), 1)
    out_ref[...] = jnp.where(lane == 0, total,
                             jnp.where(lane == 1, p0, 1.0 - p0))


def dynamic_weight_adaptive_loss(loss1, loss2, weights, learning_rate=0.01):
    """Pallas forward of DynamicWeightAdaptiveLoss.

    Args:
      loss1:   scalar (any shape with 1 element) f32 loss value
      loss2:   scalar (any shape with 1 element) f32 loss value
      weights: (2,) f32 current (post-softmax) weight state
    Returns:
      (total_loss: () f32, updated_weights: (2,) f32)
    """
    # Pack all four scalars into one 1-D SMEM operand (one input DMA).
    scalars = jnp.concatenate([
        jnp.ravel(loss1).astype(jnp.float32),
        jnp.ravel(loss2).astype(jnp.float32),
        jnp.ravel(weights).astype(jnp.float32),
    ])  # f32[4] = [loss1, loss2, w0, w1]

    out = pl.pallas_call(
        partial(_dwal_kernel, lr=float(learning_rate)),
        out_shape=jax.ShapeDtypeStruct((1, 128), jnp.float32),
        in_specs=[pl.BlockSpec(memory_space=pltpu.MemorySpace.SMEM)],
        out_specs=pl.BlockSpec(memory_space=pltpu.MemorySpace.VMEM),
        compiler_params=pltpu.CompilerParams(allow_input_fusion=[True]),
        cost_estimate=pl.CostEstimate(flops=16, transcendentals=1,
                                      bytes_accessed=528),
    )(scalars)

    total = out[0, 0]          # () f32
    new_w = out[0, 1:3]        # (2,) f32 updated (post-softmax) weight state
    return total, new_w


def _reference(loss1, loss2, weights, lr=0.01):
    w = jnp.asarray(weights, jnp.float32)
    w = w.at[0].add(lr * (loss1 - loss2))
    w = w.at[1].add(lr * (loss2 - loss1))
    w = jax.nn.softmax(w)
    return w[0] * loss1 + w[1] * loss2, w


if __name__ == "__main__":
    key = jax.random.PRNGKey(0)
    k1, k2, k3, k4 = jax.random.split(key, 4)

    # Deterministic synthetic scalar "losses" produced from small tensors
    # (stand-ins for the upstream loss reductions this op normally consumes).
    loss1 = jnp.mean(jax.random.normal(k1, (2, 4, 16, 16), jnp.float32) ** 2)
    loss2 = jnp.mean(jax.random.normal(k2, (2, 4, 16, 16), jnp.float32) ** 2)

    # module __init__: initial_weights=[1.0, 1.0], learning_rate=0.01
    weights = jnp.ones((2,), dtype=jnp.float32)
    lr = 0.01

    # Step 1.
    total, new_w = dynamic_weight_adaptive_loss(loss1, loss2, weights, lr)
    total = jax.block_until_ready(total)
    new_w = jax.block_until_ready(new_w)

    ref_total, ref_w = _reference(loss1, loss2, weights, lr)
    assert jnp.allclose(total, ref_total, rtol=1e-5, atol=1e-6), (total, ref_total)
    assert jnp.allclose(new_w, ref_w, rtol=1e-5, atol=1e-6), (new_w, ref_w)

    # Step 2: feed the updated (post-softmax) weight state straight back in,
    # matching how the PyTorch module mutates self.weights between calls.
    loss1b = jnp.mean(jax.random.normal(k3, (2, 4, 16, 16), jnp.float32) ** 2)
    loss2b = jnp.mean(jax.random.normal(k4, (2, 4, 16, 16), jnp.float32) ** 2)
    total2, new_w2 = dynamic_weight_adaptive_loss(loss1b, loss2b, new_w, lr)
    total2 = jax.block_until_ready(total2)
    new_w2 = jax.block_until_ready(new_w2)

    ref_total2, ref_w2 = _reference(loss1b, loss2b, ref_w, lr)
    assert jnp.allclose(total2, ref_total2, rtol=1e-5, atol=1e-6), (total2, ref_total2)
    assert jnp.allclose(new_w2, ref_w2, rtol=1e-5, atol=1e-6), (new_w2, ref_w2)

    print("KERNEL_OK")
</pallas_src>

<mosaic_0001>
module attributes {stable_mosaic.version = 11 : i64} {
  func.func @_dwal_kernel(%arg0: memref<4xf32, #tpu.memory_space<smem>>, %arg1: memref<1x128xf32, #tpu.memory_space<vmem>>) attributes {dimension_semantics = [], scalar_prefetch = 0 : i64, scratch_operands = 0 : i64, tpu.core_type = #tpu.core_type<tc>} {
    %c0 = arith.constant 0 : index
    %0 = memref.load %arg0[%c0] : memref<4xf32, #tpu.memory_space<smem>>
    %c1 = arith.constant 1 : index
    %1 = memref.load %arg0[%c1] : memref<4xf32, #tpu.memory_space<smem>>
    %c2 = arith.constant 2 : index
    %2 = memref.load %arg0[%c2] : memref<4xf32, #tpu.memory_space<smem>>
    %c3 = arith.constant 3 : index
    %3 = memref.load %arg0[%c3] : memref<4xf32, #tpu.memory_space<smem>>
    %4 = arith.subf %0, %1 : f32
    %cst = arith.constant 0.00999999977 : f32
    %5 = arith.mulf %cst, %4 : f32
    %6 = arith.subf %3, %5 : f32
    %7 = arith.addf %2, %5 : f32
    %8 = arith.subf %6, %7 : f32
    %9 = vector.broadcast %8 : f32 to vector<1x128xf32>
    %10 = math.exp %9 : vector<1x128xf32>
    %cst_0 = arith.constant 1.000000e+00 : f32
    %11 = vector.broadcast %cst_0 : f32 to vector<1x128xf32>
    %12 = arith.addf %11, %10 : vector<1x128xf32>
    %cst_1 = arith.constant 1.000000e+00 : f32
    %13 = vector.broadcast %cst_1 : f32 to vector<1x128xf32>
    %14 = arith.divf %13, %12 : vector<1x128xf32>
    %15 = arith.subf %0, %1 : f32
    %16 = vector.broadcast %15 : f32 to vector<1x128xf32>
    %17 = arith.mulf %14, %16 : vector<1x128xf32>
    %18 = vector.broadcast %1 : f32 to vector<1x128xf32>
    %19 = arith.addf %18, %17 : vector<1x128xf32>
    %20 = tpu.iota {dimensions = array<i32: 1>} : vector<1x128xi32>
    %c0_i32 = arith.constant 0 : i32
    %21 = vector.broadcast %c0_i32 : i32 to vector<1x128xi32>
    %22 = arith.cmpi eq, %20, %21 : vector<1x128xi32>
    %c1_i32 = arith.constant 1 : i32
    %23 = vector.broadcast %c1_i32 : i32 to vector<1x128xi32>
    %24 = arith.cmpi eq, %20, %23 : vector<1x128xi32>
    %cst_2 = arith.constant 1.000000e+00 : f32
    %25 = vector.broadcast %cst_2 : f32 to vector<1x128xf32>
    %26 = arith.subf %25, %14 : vector<1x128xf32>
    %27 = arith.select %24, %14, %26 : vector<1x128xi1>, vector<1x128xf32>
    %28 = arith.select %22, %19, %27 : vector<1x128xi1>, vector<1x128xf32>
    %c0_3 = arith.constant 0 : index
    %c0_4 = arith.constant 0 : index
    %29 = vector.load %arg1[%c0_3, %c0_4] : memref<1x128xf32, #tpu.memory_space<vmem>>, vector<1x128xf32>
    tpu.vector_store %arg1[%c0_3, %c0_4], %28 {strides = array<i32>} : memref<1x128xf32, #tpu.memory_space<vmem>>, vector<1x128xf32>,
    return
  }
}

</mosaic_0001>

<bundles_post_ra>
// kernel: tpu_custom_call.1
= control target key start
LH: loop header
LB: loop body
LE: loop exit
PB: predicated region body
PF: predicated region fallthrough
CT: control target
= control target key end

     0   :  { %6 = vsyncpa [#allocation4], 0  ;;  %s150_s0 = inlined_call_operand.hbm [shape: f32[4], index: 0, kind: input, shape index: {}]   ;;  %s151_s1 = inlined_call_operand.hbm [shape: f32[1,128], index: 1, kind: output, shape index: {}]  }
   0x1   :  { %7 = vsyncpa [#allocation3], 0  ;;  %s13_s8 = sshll.u32 %s150_s0, 4  ;;  %s128_s9 = smov [#allocation2]   ;;  %s14_s8 = int_to_ptr.hbm [resolvable:$true] %s13_s8 }
   0x2   :  { %16 = dma.hbm_to_smem %s14_s8, 16, %s128_s9, [#allocation4]  }
   0x3   :  { %124 = dma.done.wait [#allocation4], 16  }
   0x4   :  { %125 = vsyncadd [#allocation4], 4294967280 }
   0x5   :  { %21 = sfence }
   0x6   :  { %s22_s10 = sld [smem:[#allocation2]]  ;;  %v54_v7 = vlaneseq  ;;  %s129_s0 = smov [#allocation5]  }
   0x7   :  { %s143_s11 = sld [smem:[#allocation2 + $0x1]]  ;;  %s67_s19 = sshll.u32 %s129_s0, 4  ;;  %s68_s19 = int_to_ptr.vmem [resolvable:$true] %s67_s19 }
   0x8   :  { %s81_s12 = sld [smem:[#allocation2 + $0x3]]  ;;  %v55_v12 = vand.u32 127, %v54_v7  ;;  %s69_s22 = sshll.u32 %s151_s1, 4  ;;  %s70_s22 = int_to_ptr.hbm [resolvable:$true] %s69_s22 }
   0x9   :  { %s80_s13 = sld [smem:[#allocation2 + $0x2]] }
   0xa   :  { %vm57_vm4 = vcmp.eq.s32.totalorder %v55_v12, 1  ;;  %vm56_vm5 = vcmp.eq.s32.totalorder %v55_v12, 0 }
   0xd   :  { %s26_s14 = ssub.f32 %s22_s10, %s143_s11  ;;  %v52_v17 = vstv %s143_s11 }
   0xf   :  { %s27_s15 = smul.f32 0.01, %s26_s14  ;;  %v50_v14 = vstv %s26_s14 }
  0x11   :  { %s28_s16 = ssub.f32 %s81_s12, %s27_s15 }
  0x12   :  { %s29_s17 = sadd.f32 %s80_s13, %s27_s15 }
  0x14   :  { %s30_s18 = ssub.f32 %s28_s16, %s29_s17 }
  0x16   :  { %v31_v0 = vstv %s30_s18 }
  0x17   :  { %v32_v1 = vmul.f32 1.442695, %v31_v0 }
  0x19   :  { %84 = vpow2.f32 %v32_v1 }
  0x1f   :  { %v85_v2 = vpop.eup %84 }
  0x20   :  { %v34_v3 = vadd.f32 1.0, %v85_v2 }
  0x22   :  { %86 = vrcp.f32 %v34_v3  ;;  %v46_v6 = vand.u32 2147483648, %v34_v3  ;;  %vm40_vm0 = vweird.f32 %v34_v3  ;;  %v44_v9 = vand.u32 2147483647, %v34_v3 }
  0x24   :  { %v47_v11 = vor.u32 1.1754944e-38, %v46_v6  ;;  %vm45_vm3 = vcmp.eq.f32.partialorder %v44_v9, 8.507059e+37 }
  0x28   :  { %v87_v4 = vpop.eup %86 }
  0x29   :  { %v36_v5 = vmul.f32 %v87_v4, %v34_v3  ;;  %vm41_vm1 = vweird.f32 %v87_v4 }
  0x2a   :  { %vm42_vm2 = vmor %vm40_vm0, %vm41_vm1 }
  0x2b   :  { %v37_v8 = vsub.f32 1.0, %v36_v5 }
  0x2d   :  { %v38_v10 = vmul.f32 %v87_v4, %v37_v8 }
  0x2f   :  { %v39_v13 = vadd.f32 %v87_v4, %v38_v10 }
  0x31   :  { %v43_v15 = vsel %vm42_vm2, %v87_v4, %v39_v13 }
  0x32   :  { %v48_v16 = vsel %vm45_vm3, %v47_v11, %v43_v15 }
  0x33   :  { %v51_v18 = vmul.f32 %v50_v14, %v48_v16  ;;  %v58_v19 = vsub.f32 1.0, %v48_v16 }
  0x35   :  { %v53_v20 = vadd.f32 %v52_v17, %v51_v18  ;;  %v59_v21 = vsel %vm57_vm4, %v48_v16, %v58_v19 }
  0x37   :  { %v60_v22 = vsel %vm56_vm5, %v53_v20, %v59_v21 }
  0x38   :  { %61 = vst [vmem:[#allocation5] sm:$0x1] %v60_v22 }
  0x39   :  { %72 = dma.vmem_to_hbm [thread:$0]  %s68_s19, 16, %s70_s22, [#allocation3]  }
  0x3a   :  { %126 = dma.done.wait [#allocation3], 16  }
  0x3b   :  { %127 = vsyncadd [#allocation3], 4294967280 }
  0x3c   :  { %77 = vsyncpa [#allocation3], 1 }
  0x3d   :  { %78 = vsyncpa [#allocation4], 1 }

</bundles_post_ra>
